<compile_context>
chip_gen: v6e
topology: v6e:2x2x1
jax: 0.10.0
libtpu: 0.0.40
codegen_flags: <defaults>
</compile_context>

<pallas_src>
import functools

import jax
import jax.numpy as jnp
from jax.experimental import pallas as pl
from jax.experimental.pallas import tpu as pltpu


_OUT_W = 8  # packed output lanes: 0=output, 1=mu, 2=logvar, 3..7 unused (zero)


def _round_up(n, m):
    return ((n + m - 1) // m) * m


def _imputation_kernel(
    x_ref,      # (TB, D_in)      batch tile of inputs
    eps_ref,    # (TB, 1)         pre-sampled N(0,1) noise
    w1_ref,     # (D_in, HP)      linear1 weight, hidden padded to HP lanes
    b1_ref,     # (1, HP)
    gamma_ref,  # (1, HP)         LayerNorm gamma (0 on pad lanes)
    beta_ref,   # (1, HP)         LayerNorm beta  (0 on pad lanes)
    wh_ref,     # (HP, 8)         fused heads: col1 = w_mu, col2 = w_logvar, rest 0
    bh_ref,     # (1, 8)          fused bias:  col1 = b_mu, col2 = b_logvar, rest 0
    out_ref,    # (TB, 8)         packed: lane0 = output, lane1 = mu, lane2 = logvar
    *,
    hidden_true: int,
):
    x = x_ref[...]

    # Linear1 + ReLU. Padded hidden lanes stay exactly 0 (zero weight cols / bias).
    h = jnp.dot(x, w1_ref[...], preferred_element_type=jnp.float32) + b1_ref[...]
    h = jnp.maximum(h, 0.0)

    # LayerNorm over the *true* hidden lanes only (eps = 1e-5, affine).
    inv_h = 1.0 / hidden_true
    mean = jnp.sum(h, axis=-1, keepdims=True) * inv_h          # pad lanes contribute 0
    lane = jax.lax.broadcasted_iota(jnp.int32, h.shape, 1)
    valid = lane < hidden_true
    centered = jnp.where(valid, h - mean, 0.0)
    var = jnp.sum(centered * centered, axis=-1, keepdims=True) * inv_h
    hnorm = centered * jax.lax.rsqrt(var + 1e-5)
    hnorm = hnorm * gamma_ref[...] + beta_ref[...]             # pad lanes -> 0

    # Dropout -> identity (eval mode).

    # Fused heads: one narrow MXU pass produces mu (lane 1) and logvar (lane 2).
    heads = jnp.dot(hnorm, wh_ref[...], preferred_element_type=jnp.float32) + bh_ref[...]
    mu = heads[:, 1:2]
    logvar = heads[:, 2:3]

    # Reparameterization.
    std = jnp.exp(0.5 * logvar)
    out_val = mu + eps_ref[...] * std

    # Single lane-select epilogue: lane0 <- out, other lanes keep heads (mu/logvar/0).
    out_lane = jax.lax.broadcasted_iota(jnp.int32, heads.shape, 1)
    out_ref[...] = jnp.where(out_lane == 0, out_val, heads)


def imputation_forward(x, params, eps, *, block_b=8192):
    """x: (B, D_in) f32; params: dict (see init_params); eps: (B, 1) N(0,1) noise.

    Returns (output, mu, logvar), each (B, 1) f32.
    """
    B, d_in = x.shape
    H = params["w1"].shape[1]
    HP = _round_up(max(H, 128), 128)     # pad hidden to full lane width
    f32 = jnp.float32

    # --- parameter fusion / padding (constant-folds under jit) -------------
    w1 = jnp.zeros((d_in, HP), f32).at[:, :H].set(params["w1"].astype(f32))
    b1 = jnp.zeros((1, HP), f32).at[:, :H].set(params["b1"].reshape(1, H).astype(f32))
    gamma = jnp.zeros((1, HP), f32).at[:, :H].set(params["gamma"].reshape(1, H).astype(f32))
    beta = jnp.zeros((1, HP), f32).at[:, :H].set(params["beta"].reshape(1, H).astype(f32))

    wh = jnp.zeros((HP, _OUT_W), f32)
    wh = wh.at[:H, 1].set(params["w_mu"].reshape(H).astype(f32))
    wh = wh.at[:H, 2].set(params["w_logvar"].reshape(H).astype(f32))
    bh = jnp.zeros((1, _OUT_W), f32)
    bh = bh.at[0, 1].set(params["b_mu"].reshape(()).astype(f32))
    bh = bh.at[0, 2].set(params["b_logvar"].reshape(()).astype(f32))

    # --- batch tiling -------------------------------------------------------
    tb = _round_up(max(8, min(block_b, B)), 8)     # tile is always a multiple of 8
    b_pad = _round_up(B, tb)
    xp = x.astype(f32)
    ep = eps.astype(f32)
    if b_pad != B:
        # Pad only the remainder rows (no full-batch rewrite when B % tb == 0).
        pad = b_pad - B
        xp = jnp.concatenate([xp, jnp.zeros((pad, d_in), f32)], axis=0)
        ep = jnp.concatenate([ep, jnp.zeros((pad, 1), f32)], axis=0)
    grid = (b_pad // tb,)

    kernel = functools.partial(_imputation_kernel, hidden_true=H)

    packed = pl.pallas_call(
        kernel,
        out_shape=jax.ShapeDtypeStruct((b_pad, _OUT_W), f32),
        grid=grid,
        in_specs=[
            pl.BlockSpec((tb, d_in), lambda i: (i, 0)),       # x tile
            pl.BlockSpec((tb, 1), lambda i: (i, 0)),          # eps tile
            pl.BlockSpec((d_in, HP), lambda i: (0, 0)),       # resident weights ----
            pl.BlockSpec((1, HP), lambda i: (0, 0)),
            pl.BlockSpec((1, HP), lambda i: (0, 0)),
            pl.BlockSpec((1, HP), lambda i: (0, 0)),
            pl.BlockSpec((HP, _OUT_W), lambda i: (0, 0)),
            pl.BlockSpec((1, _OUT_W), lambda i: (0, 0)),
        ],
        out_specs=pl.BlockSpec((tb, _OUT_W), lambda i: (i, 0)),
        compiler_params=pltpu.CompilerParams(
            dimension_semantics=("parallel",),
            vmem_limit_bytes=48 * 1024 * 1024,
        ),
    )(xp, ep, w1, b1, gamma, beta, wh, bh)

    out = packed[:B, 0:1]
    mu = packed[:B, 1:2]
    logvar = packed[:B, 2:3]
    return out, mu, logvar


def init_params(key, input_size, hidden_size):
    """Deterministic parameter init (PyTorch-like uniform fan-in scaling)."""
    k1, k2, k3, k4, k5, k6 = jax.random.split(key, 6)
    lim1 = 1.0 / jnp.sqrt(input_size)
    limh = 1.0 / jnp.sqrt(hidden_size)
    return {
        "w1": jax.random.uniform(k1, (input_size, hidden_size), jnp.float32, -lim1, lim1),
        "b1": jax.random.uniform(k2, (1, hidden_size), jnp.float32, -lim1, lim1),
        "gamma": jnp.ones((1, hidden_size), jnp.float32),
        "beta": jnp.zeros((1, hidden_size), jnp.float32),
        "w_mu": jax.random.uniform(k3, (hidden_size, 1), jnp.float32, -limh, limh),
        "b_mu": jax.random.uniform(k4, (1, 1), jnp.float32, -limh, limh),
        "w_logvar": jax.random.uniform(k5, (hidden_size, 1), jnp.float32, -limh, limh),
        "b_logvar": jax.random.uniform(k6, (1, 1), jnp.float32, -limh, limh),
    }


def reference_forward(x, params, eps):
    """Pure-JAX reference of the same forward (for sanity checking)."""
    h = x @ params["w1"] + params["b1"]
    h = jnp.maximum(h, 0.0)
    mean = jnp.mean(h, axis=-1, keepdims=True)
    var = jnp.mean((h - mean) ** 2, axis=-1, keepdims=True)
    h = (h - mean) / jnp.sqrt(var + 1e-5) * params["gamma"] + params["beta"]
    mu = h @ params["w_mu"] + params["b_mu"]
    logvar = h @ params["w_logvar"] + params["b_logvar"]
    std = jnp.exp(0.5 * logvar)
    return mu + eps * std, mu, logvar


if __name__ == "__main__":
    INPUT_SIZE = 16
    HIDDEN = 32

    key = jax.random.PRNGKey(0)
    kp, kdata = jax.random.split(key)
    params = init_params(kp, INPUT_SIZE, HIDDEN)

    # Single-tile case, multi-tile case, and a ragged-batch case.
    for B, blk in ((8, 8192), (512, 128), (777, 256)):
        kx, keps, kdata = jax.random.split(kdata, 3)
        x = jax.random.normal(kx, (B, INPUT_SIZE), jnp.float32)
        eps = jax.random.normal(keps, (B, 1), jnp.float32)  # deterministic "randn_like"

        out, mu, logvar = imputation_forward(x, params, eps, block_b=blk)
        jax.block_until_ready((out, mu, logvar))

        ref_out, ref_mu, ref_lv = reference_forward(x, params, eps)
        assert out.shape == (B, 1) and mu.shape == (B, 1) and logvar.shape == (B, 1)
        assert jnp.allclose(out, ref_out, atol=1e-4, rtol=1e-4)
        assert jnp.allclose(mu, ref_mu, atol=1e-4, rtol=1e-4)
        assert jnp.allclose(logvar, ref_lv, atol=1e-4, rtol=1e-4)

    print("KERNEL_OK")
</pallas_src>

<mosaic_0001>
module attributes {stable_mosaic.version = 11 : i64} {
  func.func @_imputation_kernel(%arg0: i32, %arg1: memref<8x16xf32, #tpu.memory_space<vmem>>, %arg2: memref<8x1xf32, #tpu.memory_space<vmem>>, %arg3: memref<16x128xf32, #tpu.memory_space<vmem>>, %arg4: memref<1x128xf32, #tpu.memory_space<vmem>>, %arg5: memref<1x128xf32, #tpu.memory_space<vmem>>, %arg6: memref<1x128xf32, #tpu.memory_space<vmem>>, %arg7: memref<128x8xf32, #tpu.memory_space<vmem>>, %arg8: memref<1x8xf32, #tpu.memory_space<vmem>>, %arg9: memref<8x8xf32, #tpu.memory_space<vmem>>) attributes {dimension_semantics = [#tpu.dimension_semantics<parallel>], iteration_bounds = array<i64: 1>, scalar_prefetch = 0 : i64, scratch_operands = 0 : i64, tpu.core_type = #tpu.core_type<tc>, window_params = [{transform_indices = @transform_0, window_bounds = array<i64: 8, 16>}, {transform_indices = @transform_1, window_bounds = array<i64: 8, 1>}, {pipeline_mode = #tpu.pipeline_mode<synchronous>, transform_indices = @transform_2, window_bounds = array<i64: 16, 128>}, {pipeline_mode = #tpu.pipeline_mode<synchronous>, transform_indices = @transform_3, window_bounds = array<i64: 1, 128>}, {pipeline_mode = #tpu.pipeline_mode<synchronous>, transform_indices = @transform_4, window_bounds = array<i64: 1, 128>}, {pipeline_mode = #tpu.pipeline_mode<synchronous>, transform_indices = @transform_5, window_bounds = array<i64: 1, 128>}, {pipeline_mode = #tpu.pipeline_mode<synchronous>, transform_indices = @transform_6, window_bounds = array<i64: 128, 8>}, {pipeline_mode = #tpu.pipeline_mode<synchronous>, transform_indices = @transform_7, window_bounds = array<i64: 1, 8>}, {transform_indices = @transform_8, window_bounds = array<i64: 8, 8>}]} {
    %c0 = arith.constant 0 : index
    %c0_0 = arith.constant 0 : index
    %0 = vector.load %arg1[%c0, %c0_0] : memref<8x16xf32, #tpu.memory_space<vmem>>, vector<8x16xf32>
    %c0_1 = arith.constant 0 : index
    %c0_2 = arith.constant 0 : index
    %1 = vector.load %arg3[%c0_1, %c0_2] : memref<16x128xf32, #tpu.memory_space<vmem>>, vector<16x128xf32>
    %cst = arith.constant dense<0.000000e+00> : vector<8x128xf32>
    %2 = tpu.matmul %0, %1, %cst {dimension_numbers = #tpu.dot_dimension_numbers<[1], [0], [0], [1], [0, 0, 1, 1], [], []>} : vector<8x16xf32>, vector<16x128xf32>, vector<8x128xf32> -> vector<8x128xf32>
    %c0_3 = arith.constant 0 : index
    %c0_4 = arith.constant 0 : index
    %3 = vector.load %arg4[%c0_3, %c0_4] : memref<1x128xf32, #tpu.memory_space<vmem>>, vector<1x128xf32>
    %4 = vector.broadcast %3 : vector<1x128xf32> to vector<8x128xf32>
    %5 = arith.addf %2, %4 : vector<8x128xf32>
    %cst_5 = arith.constant 0.000000e+00 : f32
    %6 = vector.broadcast %cst_5 : f32 to vector<8x128xf32>
    %7 = arith.maximumf %5, %6 : vector<8x128xf32>
    %cst_6 = arith.constant dense<0.000000e+00> : vector<8xf32>
    %8 = vector.multi_reduction <add>, %7, %cst_6 [1] : vector<8x128xf32> to vector<8xf32>
    %9 = vector.shape_cast %8 : vector<8xf32> to vector<8x1xf32>
    %cst_7 = arith.constant 3.125000e-02 : f32
    %10 = vector.broadcast %cst_7 : f32 to vector<8x1xf32>
    %11 = arith.mulf %9, %10 : vector<8x1xf32>
    %12 = tpu.iota {dimensions = array<i32: 1>} : vector<8x128xi32>
    %c32_i32 = arith.constant 32 : i32
    %13 = vector.broadcast %c32_i32 : i32 to vector<8x128xi32>
    %14 = arith.cmpi slt, %12, %13 : vector<8x128xi32>
    %15 = vector.broadcast %11 : vector<8x1xf32> to vector<8x128xf32>
    %16 = arith.subf %7, %15 : vector<8x128xf32>
    %cst_8 = arith.constant 0.000000e+00 : f32
    %17 = vector.broadcast %cst_8 : f32 to vector<8x128xf32>
    %18 = arith.select %14, %16, %17 : vector<8x128xi1>, vector<8x128xf32>
    %19 = arith.mulf %18, %18 : vector<8x128xf32>
    %cst_9 = arith.constant dense<0.000000e+00> : vector<8xf32>
    %20 = vector.multi_reduction <add>, %19, %cst_9 [1] : vector<8x128xf32> to vector<8xf32>
    %21 = vector.shape_cast %20 : vector<8xf32> to vector<8x1xf32>
    %cst_10 = arith.constant 3.125000e-02 : f32
    %22 = vector.broadcast %cst_10 : f32 to vector<8x1xf32>
    %23 = arith.mulf %21, %22 : vector<8x1xf32>
    %cst_11 = arith.constant 9.99999974E-6 : f32
    %24 = vector.broadcast %cst_11 : f32 to vector<8x1xf32>
    %25 = arith.addf %23, %24 : vector<8x1xf32>
    %26 = math.rsqrt %25 : vector<8x1xf32>
    %27 = vector.broadcast %26 : vector<8x1xf32> to vector<8x128xf32>
    %28 = arith.mulf %18, %27 : vector<8x128xf32>
    %c0_12 = arith.constant 0 : index
    %c0_13 = arith.constant 0 : index
    %29 = vector.load %arg5[%c0_12, %c0_13] : memref<1x128xf32, #tpu.memory_space<vmem>>, vector<1x128xf32>
    %30 = vector.broadcast %29 : vector<1x128xf32> to vector<8x128xf32>
    %31 = arith.mulf %28, %30 : vector<8x128xf32>
    %c0_14 = arith.constant 0 : index
    %c0_15 = arith.constant 0 : index
    %32 = vector.load %arg6[%c0_14, %c0_15] : memref<1x128xf32, #tpu.memory_space<vmem>>, vector<1x128xf32>
    %33 = vector.broadcast %32 : vector<1x128xf32> to vector<8x128xf32>
    %34 = arith.addf %31, %33 : vector<8x128xf32>
    %c0_16 = arith.constant 0 : index
    %c0_17 = arith.constant 0 : index
    %35 = vector.load %arg7[%c0_16, %c0_17] : memref<128x8xf32, #tpu.memory_space<vmem>>, vector<128x8xf32>
    %cst_18 = arith.constant dense<0.000000e+00> : vector<8x8xf32>
    %36 = tpu.matmul %34, %35, %cst_18 {dimension_numbers = #tpu.dot_dimension_numbers<[1], [0], [0], [1], [0, 0, 1, 1], [], []>} : vector<8x128xf32>, vector<128x8xf32>, vector<8x8xf32> -> vector<8x8xf32>
    %c0_19 = arith.constant 0 : index
    %c0_20 = arith.constant 0 : index
    %37 = vector.load %arg8[%c0_19, %c0_20] : memref<1x8xf32, #tpu.memory_space<vmem>>, vector<1x8xf32>
    %38 = vector.broadcast %37 : vector<1x8xf32> to vector<8x8xf32>
    %39 = arith.addf %36, %38 : vector<8x8xf32>
    %40 = vector.extract_strided_slice %39 {offsets = [0, 1], sizes = [8, 1], strides = [1, 1]} : vector<8x8xf32> to vector<8x1xf32>
    %41 = vector.extract_strided_slice %39 {offsets = [0, 2], sizes = [8, 1], strides = [1, 1]} : vector<8x8xf32> to vector<8x1xf32>
    %cst_21 = arith.constant 5.000000e-01 : f32
    %42 = vector.broadcast %cst_21 : f32 to vector<8x1xf32>
    %43 = arith.mulf %42, %41 : vector<8x1xf32>
    %44 = math.exp %43 : vector<8x1xf32>
    %c0_22 = arith.constant 0 : index
    %c0_23 = arith.constant 0 : index
    %45 = vector.load %arg2[%c0_22, %c0_23] : memref<8x1xf32, #tpu.memory_space<vmem>>, vector<8x1xf32>
    %46 = arith.mulf %45, %44 : vector<8x1xf32>
    %47 = arith.addf %40, %46 : vector<8x1xf32>
    %48 = tpu.iota {dimensions = array<i32: 1>} : vector<8x8xi32>
    %c0_i32 = arith.constant 0 : i32
    %49 = vector.broadcast %c0_i32 : i32 to vector<8x8xi32>
    %50 = arith.cmpi eq, %48, %49 : vector<8x8xi32>
    %51 = vector.shape_cast %47 : vector<8x1xf32> to vector<8x1xf32>
    %52 = vector.broadcast %51 : vector<8x1xf32> to vector<8x8xf32>
    %53 = arith.select %50, %52, %39 : vector<8x8xi1>, vector<8x8xf32>
    %c0_24 = arith.constant 0 : index
    %c0_25 = arith.constant 0 : index
    %54 = vector.load %arg9[%c0_24, %c0_25] : memref<8x8xf32, #tpu.memory_space<vmem>>, vector<8x8xf32>
    tpu.vector_store %arg9[%c0_24, %c0_25], %53 {strides = array<i32>} : memref<8x8xf32, #tpu.memory_space<vmem>>, vector<8x8xf32>,
    return
  }
  func.func @transform_0(%arg0: i32) -> (i32, i32) {
    %c0_i32 = arith.constant 0 : i32
    %c0_i32_0 = arith.constant 0 : i32
    return %arg0, %c0_i32 : i32, i32
  }
  func.func @transform_1(%arg0: i32) -> (i32, i32) {
    %c0_i32 = arith.constant 0 : i32
    %c0_i32_0 = arith.constant 0 : i32
    return %arg0, %c0_i32 : i32, i32
  }
  func.func @transform_2(%arg0: i32) -> (i32, i32) {
    %c0_i32 = arith.constant 0 : i32
    %c0_i32_0 = arith.constant 0 : i32
    %c0_i32_1 = arith.constant 0 : i32
    return %c0_i32, %c0_i32_0 : i32, i32
  }
  func.func @transform_3(%arg0: i32) -> (i32, i32) {
    %c0_i32 = arith.constant 0 : i32
    %c0_i32_0 = arith.constant 0 : i32
    %c0_i32_1 = arith.constant 0 : i32
    return %c0_i32, %c0_i32_0 : i32, i32
  }
  func.func @transform_4(%arg0: i32) -> (i32, i32) {
    %c0_i32 = arith.constant 0 : i32
    %c0_i32_0 = arith.constant 0 : i32
    %c0_i32_1 = arith.constant 0 : i32
    return %c0_i32, %c0_i32_0 : i32, i32
  }
  func.func @transform_5(%arg0: i32) -> (i32, i32) {
    %c0_i32 = arith.constant 0 : i32
    %c0_i32_0 = arith.constant 0 : i32
    %c0_i32_1 = arith.constant 0 : i32
    return %c0_i32, %c0_i32_0 : i32, i32
  }
  func.func @transform_6(%arg0: i32) -> (i32, i32) {
    %c0_i32 = arith.constant 0 : i32
    %c0_i32_0 = arith.constant 0 : i32
    %c0_i32_1 = arith.constant 0 : i32
    return %c0_i32, %c0_i32_0 : i32, i32
  }
  func.func @transform_7(%arg0: i32) -> (i32, i32) {
    %c0_i32 = arith.constant 0 : i32
    %c0_i32_0 = arith.constant 0 : i32
    %c0_i32_1 = arith.constant 0 : i32
    return %c0_i32, %c0_i32_0 : i32, i32
  }
  func.func @transform_8(%arg0: i32) -> (i32, i32) {
    %c0_i32 = arith.constant 0 : i32
    %c0_i32_0 = arith.constant 0 : i32
    return %arg0, %c0_i32 : i32, i32
  }
}

</mosaic_0001>

<bundles_post_ra>
// kernel: tpu_custom_call.1
= control target key start
LH: loop header
LB: loop body
LE: loop exit
PB: predicated region body
PF: predicated region fallthrough
CT: control target
= control target key end

     0   :  { %v376_v1 = vmov 0.0   ;;  %vm377_vm0 = vmmov 0   ;;  %s526_s0 = inlined_call_operand.vmem [shape: f32[8,16], index: 0, kind: input, shape index: {}]   ;;  %s527_s1 = inlined_call_operand.vmem [shape: f32[8,1], index: 1, kind: input, shape index: {}]   ;;  %s528_s2 = inlined_call_operand.vmem [shape: f32[16,128], index: 2, kind: input, shape index: {}]   ;;  %s529_s3 = inlined_call_operand.vmem [shape: f32[1,128], index: 3, kind: input, shape index: {}]   ;;  %s530_s4 = inlined_call_operand.vmem [shape: f32[1,128], index: 4, kind: input, shape index: {}]   ;;  %s531_s5 = inlined_call_operand.vmem [shape: f32[1,128], index: 5, kind: input, shape index: {}]   ;;  %s532_s6 = inlined_call_operand.vmem [shape: f32[128,8], index: 6, kind: input, shape index: {}]   ;;  %s533_s7 = inlined_call_operand.vmem [shape: f32[1,8], index: 7, kind: input, shape index: {}]   ;;  %s534_s8 = inlined_call_operand.hbm [shape: f32[8,8], index: 8, kind: output, shape index: {}]  }
   0x1   :  { %v32_v0 = vld [vmem:[%s528_s2 + $0x8] sm:$0xff]  ;;  %301 = vmatprep.subr.mxu0 %v376_v1  ;;  %v31_v2 = vld [vmem:[%s528_s2] sm:$0xff]  ;;  %305 = vmatprep.mubr.msk.f32.mxu0 %vm377_vm0, %v376_v1 }
   0x2   :  { %13 = vsyncpa [#allocation3], 0  ;;  %302 = vmatpush3.msra.mxu0 %v32_v0  ;;  %v30_v3 = vld [vmem:[%s526_s0] sm:$0xff]  ;;  %vm40_vm1 = vcmask 130048   ;;  %308 = vmatprep.subr.mxu1 %v376_v1  ;;  %v161_v9 = vld [vmem:[%s532_s6 + $0x78] sm:$0xff]  ;;  %v118_v13 = vlaneseq  ;;  %v379_v48 = vmov 1  }
   0x3   :  { %303 = vmatprep.subr.mxu0 %v376_v1  ;;  %340 = vmatprep.mubr.msk.f32.mxu1 %vm377_vm0, %v376_v1  ;;  %v276_v4 = vld [vmem:[%s529_s3] ss:$0 sm:$0xff]  ;;  %v160_v10 = vld [vmem:[%s532_s6 + $0x70] sm:$0xff]  ;;  %v159_v11 = vld [vmem:[%s532_s6 + $0x68] sm:$0xff]  ;;  %s380_s23 = smov 1   ;;  %vm260_vm4 = vcmask 64512  }
   0x4   :  { %304 = vmatpush3.msra.mxu0 %v31_v2  ;;  %309 = vmatpush3.msra.mxu1 %v161_v9  ;;  %v158_v12 = vld [vmem:[%s532_s6 + $0x60] sm:$0xff]  ;;  %v460_v14 = vand.u32 127, %v118_v13  ;;  %v157_v20 = vld [vmem:[%s532_s6 + $0x58] sm:$0xff]  ;;  %v156_v21 = vld [vmem:[%s532_s6 + $0x50] sm:$0xff] }
   0x5   :  { %306 = vmatmul.mubr.msk.f32.vlgmr.msra.gmra.mxu0 %vm40_vm1, %v30_v3  ;;  %310 = vmatprep.subr.mxu1 %v376_v1  ;;  %v155_v22 = vld [vmem:[%s532_s6 + $0x48] sm:$0xff]  ;;  %v154_v23 = vld [vmem:[%s532_s6 + $0x40] sm:$0xff]  ;;  %v153_v24 = vld [vmem:[%s532_s6 + $0x38] sm:$0xff] }
   0x6   :  { %311 = vmatpush3.msra.mxu1 %v160_v10  ;;  %vm120_vm2 = vcmp.lt.s32.totalorder %v460_v14, 32  ;;  %v152_v25 = vld [vmem:[%s532_s6 + $0x30] sm:$0xff]  ;;  %v151_v26 = vld [vmem:[%s532_s6 + $0x28] sm:$0xff]  ;;  %v150_v27 = vld [vmem:[%s532_s6 + $0x20] sm:$0xff]  ;;  %349 = vset.pattern.permute.xlu0 %v379_v48  ;;  %vm253_vm3 = vcmp.eq.s32.totalorder %v460_v14, 0 }
   0x7   :  { %312 = vmatprep.subr.mxu1 %v376_v1  ;;  %v149_v28 = vld [vmem:[%s532_s6 + $0x18] sm:$0xff]  ;;  %v148_v29 = vld [vmem:[%s532_s6 + $0x10] sm:$0xff]  ;;  %v147_v30 = vld [vmem:[%s532_s6 + $0x8] sm:$0xff] }
   0x8   :  { %313 = vmatpush3.msra.mxu1 %v159_v11  ;;  %v146_v31 = vld [vmem:[%s532_s6] sm:$0xff] }
   0x9   :  { %314 = vmatprep.subr.mxu1 %v376_v1  ;;  %v278_v36 = vld [vmem:[%s530_s4] ss:$0 sm:$0xff]  ;;  %s378_s4 = smov 126  }
   0xa   :  { %315 = vmatpush3.msra.mxu1 %v158_v12  ;;  %v279_v38 = vld [vmem:[%s531_s5] ss:$0 sm:$0xff] }
   0xb   :  { %316 = vmatprep.subr.mxu1 %v376_v1  ;;  %v280_v41 = vld [vmem:[%s533_s7] ss:$0 sm:$0xff]  ;;  %s381_s7 = smov [#allocation2]  }
   0xc   :  { %317 = vmatpush3.msra.mxu1 %v157_v20  ;;  %v242_v49 = vld [vmem:[%s527_s1] sm:$0xff]  ;;  %s268_s24 = sshll.u32 %s381_s7, 4  ;;  %s269_s24 = int_to_ptr.vmem [resolvable:$true] %s268_s24 }
   0xd   :  { %318 = vmatprep.subr.mxu1 %v376_v1  ;;  %s354_s25 = scalar_lea.vmem %s269_s24, 128  ;;  %p359_p1 = scmp.lt.s32.totalorder %s269_s24, %s269_s24 }
   0xe   :  { %319 = vmatpush3.msra.mxu1 %v156_v21  ;;  %p355_p0 = scmp.ne.s32.totalorder %s269_s24, %s354_s25  ;;  %p360_p2 = scmp.lt.s32.totalorder %s354_s25, %s354_s25 }
   0xf   :  { %320 = vmatprep.subr.mxu1 %v376_v1 }
  0x10   :  { %321 = vmatpush3.msra.mxu1 %v155_v22  ;;  %p361_p3 = por %p360_p2, %p359_p1 }
  0x11   :  { %322 = vmatprep.subr.mxu1 %v376_v1 }
  0x12   :  { %323 = vmatpush3.msra.mxu1 %v154_v23  ;;  %p362_p4 = pnand %p361_p3, %p355_p0 }
  0x13   :  { %324 = vmatprep.subr.mxu1 %v376_v1 }
  0x14   :  { %325 = vmatpush3.msra.mxu1 %v153_v24 }
  0x15   :  { %326 = vmatprep.subr.mxu1 %v376_v1 }
  0x16   :  { %327 = vmatpush3.msra.mxu1 %v152_v25 }
  0x17   :  { %328 = vmatprep.subr.mxu1 %v376_v1 }
  0x18   :  { %329 = vmatpush3.msra.mxu1 %v151_v26 }
  0x19   :  { %330 = vmatprep.subr.mxu1 %v376_v1 }
  0x1a   :  { %331 = vmatpush3.msra.mxu1 %v150_v27 }
  0x1b   :  { %332 = vmatprep.subr.mxu1 %v376_v1 }
  0x1c   :  { %333 = vmatpush3.msra.mxu1 %v149_v28 }
  0x1d   :  { %334 = vmatprep.subr.mxu1 %v376_v1 }
  0x1e   :  { %335 = vmatpush3.msra.mxu1 %v148_v29 }
  0x1f   :  { %336 = vmatprep.subr.mxu1 %v376_v1 }
  0x20   :  { %337 = vmatpush3.msra.mxu1 %v147_v30 }
  0x21   :  { %338 = vmatprep.subr.mxu1 %v376_v1 }
  0x22   :  { %339 = vmatpush3.msra.mxu1 %v146_v31 }
  0xc5   :  { %v110_v5 = vpop.f32.mrf.mxu0 }
  0xc6   :  { %v111_v6 = vadd.f32 %v276_v4, %v110_v5 }
  0xc7   :  { %v307_v7 = vpop.f32.mrf.mxu0 }
  0xc8   :  { %v114_v8 = vmax.f32 %v111_v6, 0.0 }
  0xca   :  { %115 = vadd.xlane.f32.xlu0 %v114_v8 }
 0x153   :  { %v116_v15 = vpop.xlane.xlu0 %115 }
 0x154   :  { %v117_v16 = vmul.f32 0.03125, %v116_v15 }
 0x156   :  { %v121_v17 = vsub.f32 %v114_v8, %v117_v16 }
 0x158   :  { %v122_v18 = vsel %vm120_vm2, %v121_v17, 0.0 }
 0x159   :  { %v123_v19 = vmul.f32 %v122_v18, %v122_v18 }
 0x15b   :  { %124 = vadd.xlane.f32.xlu0 %v123_v19 }
 0x1e4   :  { %v125_v32 = vpop.xlane.xlu0 %124 }
 0x1e5   :  { %v126_v33 = vmul.f32 0.03125, %v125_v32 }
 0x1e7   :  { %v127_v34 = vadd.f32 1e-05, %v126_v33 }
 0x1e9   :  { %350 = vrsqrt.f32 %v127_v34 }
 0x1f6   :  { %v351_v35 = vpop.eup %350 }
 0x1f7   :  { %v129_v37 = vmul.f32 %v351_v35, %v122_v18 }
 0x1f9   :  { %v137_v39 = vmul.f32 %v278_v36, %v129_v37 }
 0x1fb   :  { %v145_v40 = vadd.f32 %v279_v38, %v137_v39 }
 0x1fd   :  { %341 = vmatmul.mubr.f32.vlgmr.msra.gmra.mxu1 %v145_v40 }
 0x2bd   :  { %v235_v42 = vpop.f32.mrf.mxu1 }
 0x2be   :  { %v236_v43 = vadd.f32 %v280_v41, %v235_v42 }
 0x2bf   :  { %v342_v44 = vpop.f32.mrf.mxu1 }
 0x2c0   :  { %v239_v45 = vmul.f32 0.5, %v236_v43 }
 0x2c2   :  { %v240_v46 = vmul.f32 1.442695, %v239_v45 }
 0x2c4   :  { %352 = vpow2.f32 %v240_v46 }
 0x2d1   :  { %v353_v47 = vpop.eup %352 }
 0x2d2   :  { %244 = vrot.lane.b32.xlu1 %v353_v47, %s378_s4 }
 0x344   :  { %v245_v50 = vpop.permute.xlu1 %244 }
 0x345   :  { %v247_v51 = vmul.f32 %v245_v50, %v242_v49 }
 0x347   :  { %249 = vrot.lane.b32.xlu1 %v247_v51, %s380_s23 }
 0x3b9   :  { %v250_v52 = vpop.permute.xlu1 %249 }
 0x3ba   :  { %v252_v53 = vadd.f32 %v250_v52, %v236_v43 }
 0x3bc   :  { %256 = vperm.xlu0 %349, %v252_v53  }
 0x437   :  { %v257_v54 = vpop.permute.xlu0 %256 }
 0x438   :  { %v259_v55 = vsel %vm253_vm3, %v257_v54, %v236_v43 }
 0x439   :  { %261 = vst.msk [vmem:[#allocation2] sm:$0xff] %vm260_vm4, %v259_v55 }
 0x43a   :  { %365 = shalt.err (!%p362_p4)
}
 0x43b   :  { %271 = dma.vmem_to_hbm [thread:$0]  %s269_s24, 128, %s534_s8, [#allocation3]  }
 0x43c   :  { %374 = dma.done.wait [#allocation3], 128  }
 0x43d   :  { %375 = vsyncadd [#allocation3], 4294967168 }
 0x43e   :  { %275 = vsyncpa [#allocation3], 1 }

</bundles_post_ra>
